<compile_context>
chip_gen: v7x
topology: tpu7x:2x2x1
jax: 0.10.0
libtpu: 0.0.40
codegen_flags: <defaults>
</compile_context>

<pallas_src>
import math

import jax
import jax.numpy as jnp
from jax.experimental import pallas as pl
from jax.experimental.pallas import tpu as pltpu

_LANES = 128
_MAX_BLOCK_ROWS = 2048   # 2048 x 128 x 4 B = 1 MiB f32 per input block
_ROW_ALIGN = 32          # row granularity safe for f32 / bf16 / int8 tiling
_NUM_CORES = 2           # shard reduction across TensorCores (v7x); serial elsewhere


def _round_up(x: int, m: int) -> int:
    return ((x + m - 1) // m) * m


def _make_gan_loss_kernel(gan_mode: str, target: float, block_rows: int):
    """Builds the per-tile reduction body, closed over mode / label / tile size."""
    groups = block_rows // 8

    def kernel(x_ref, acc_ref):
        i = pl.program_id(1)  # reduction axis

        @pl.when(i == 0)
        def _():
            acc_ref[...] = jnp.zeros_like(acc_ref)

        x = x_ref[...].astype(jnp.float32)

        if gan_mode == "lsgan":
            d = x - target          # target is a Python float literal
            per_elem = d * d
        else:  # 'vanila' -> BCEWithLogitsLoss (numerically stable form)
            per_elem = (
                jnp.maximum(x, 0.0)
                - x * target
                + jnp.log1p(jnp.exp(-jnp.abs(x)))
            )

        # Fold (block_rows, 128) into the (8, 128) accumulator with VPU adds
        # only; the expensive cross-lane reduce is deferred to the wrapper.
        acc_ref[...] += jnp.sum(per_elem.reshape(groups, 8, _LANES), axis=0)

    return kernel


def gan_loss(prediction, target_is_real: bool, gan_mode: str = "lsgan"):
    """Pallas implementation of GANLoss.forward(prediction, target_is_real)."""
    if gan_mode not in ("lsgan", "vanila"):
        raise NotImplementedError(f"gan_mode={gan_mode!r} has no defined forward")

    target = 1.0 if target_is_real else 0.0

    flat = prediction.reshape(-1)  # keep native dtype; kernel casts per tile
    n = flat.shape[0]

    rows = -(-n // _LANES)
    block_rows = min(_MAX_BLOCK_ROWS, _round_up(rows, _ROW_ALIGN))
    padded_rows = _round_up(rows, block_rows * _NUM_CORES)
    padded_n = padded_rows * _LANES
    if padded_n != n:
        flat = jnp.pad(flat, (0, padded_n - n))
    x2d = flat.reshape(padded_rows, _LANES)

    tiles_per_core = padded_rows // (block_rows * _NUM_CORES)

    kernel = _make_gan_loss_kernel(gan_mode, target, block_rows)

    partials = pl.pallas_call(
        kernel,
        out_shape=jax.ShapeDtypeStruct((_NUM_CORES * 8, _LANES), jnp.float32),
        grid_spec=pltpu.PrefetchScalarGridSpec(
            num_scalar_prefetch=0,
            grid=(_NUM_CORES, tiles_per_core),
            in_specs=[
                pl.BlockSpec(
                    (block_rows, _LANES),
                    lambda c, i: (c * tiles_per_core + i, 0),
                ),
            ],
            # One (8, 128) partial-sum block per core, resident across the
            # reduction axis (accumulator pattern).
            out_specs=pl.BlockSpec((8, _LANES), lambda c, i: (c, 0)),
        ),
        compiler_params=pltpu.CompilerParams(
            dimension_semantics=("parallel", "arbitrary"),
        ),
    )(x2d)

    total = jnp.sum(partials)

    # Zero padding was summed unmasked; its per-element contribution is a
    # compile-time constant -> subtract analytically, then take the mean.
    pad_count = padded_n - n
    if pad_count:
        if gan_mode == "lsgan":
            pad_val = (0.0 - target) ** 2          # 1.0 if real else 0.0
        else:
            pad_val = math.log(2.0)                # max(0,0) - 0*t + log(1+e^0)
        total = total - jnp.float32(pad_count * pad_val)

    return total / jnp.float32(n)


def _reference_loss(prediction, target_is_real, gan_mode):
    t = jnp.float32(1.0 if target_is_real else 0.0)
    x = prediction.astype(jnp.float32)
    if gan_mode == "lsgan":
        return jnp.mean((x - t) ** 2)
    return jnp.mean(jnp.maximum(x, 0.0) - x * t + jnp.log1p(jnp.exp(-jnp.abs(x))))


if __name__ == "__main__":
    key = jax.random.PRNGKey(0)
    # Discriminator-logit-like input: NCHW (batch=2, channels=4, spatial=16)
    prediction = jax.random.normal(key, (2, 4, 16, 16), dtype=jnp.float32)

    ok = True
    for gan_mode in ("lsgan", "vanila"):
        for target_is_real in (True, False):
            loss = jax.block_until_ready(
                gan_loss(prediction, target_is_real, gan_mode=gan_mode)
            )
            ref = _reference_loss(prediction, target_is_real, gan_mode)
            if not jnp.allclose(loss, ref, rtol=1e-5, atol=1e-5):
                ok = False

    print("KERNEL_OK" if ok else "KERNEL_MISMATCH")
</pallas_src>

<mosaic_0001>
module attributes {stable_mosaic.version = 11 : i64} {
  func.func @kernel(%arg0: i32, %arg1: i32, %arg2: memref<32x128xf32, #tpu.memory_space<vmem>>, %arg3: memref<8x128xf32, #tpu.memory_space<vmem>>) attributes {dimension_semantics = [#tpu.dimension_semantics<parallel>, #tpu.dimension_semantics<arbitrary>], iteration_bounds = array<i64: 2, 1>, scalar_prefetch = 0 : i64, scratch_operands = 0 : i64, tpu.core_type = #tpu.core_type<tc>, window_params = [{transform_indices = @transform_0, window_bounds = array<i64: 32, 128>}, {transform_indices = @transform_1, window_bounds = array<i64: 8, 128>}]} {
    %c0_i32 = arith.constant 0 : i32
    %0 = arith.cmpi eq, %arg1, %c0_i32 : i32
    %1 = arith.extui %0 : i1 to i32
    %c0_i32_0 = arith.constant 0 : i32
    %2 = arith.cmpi ne, %1, %c0_i32_0 : i32
    scf.if %2 {
      %cst_7 = arith.constant 0.000000e+00 : f32
      %12 = vector.broadcast %cst_7 : f32 to vector<8x128xf32>
      %c0_8 = arith.constant 0 : index
      %c0_9 = arith.constant 0 : index
      %13 = vector.load %arg3[%c0_8, %c0_9] : memref<8x128xf32, #tpu.memory_space<vmem>>, vector<8x128xf32>
      tpu.vector_store %arg3[%c0_8, %c0_9], %12 {strides = array<i32>} : memref<8x128xf32, #tpu.memory_space<vmem>>, vector<8x128xf32>,
    } else {
    }
    %c0 = arith.constant 0 : index
    %c0_1 = arith.constant 0 : index
    %3 = vector.load %arg2[%c0, %c0_1] : memref<32x128xf32, #tpu.memory_space<vmem>>, vector<32x128xf32>
    %cst = arith.constant 1.000000e+00 : f32
    %4 = vector.broadcast %cst : f32 to vector<32x128xf32>
    %5 = arith.subf %3, %4 : vector<32x128xf32>
    %6 = arith.mulf %5, %5 : vector<32x128xf32>
    %c0_2 = arith.constant 0 : index
    %c0_3 = arith.constant 0 : index
    %7 = vector.load %arg3[%c0_2, %c0_3] : memref<8x128xf32, #tpu.memory_space<vmem>>, vector<8x128xf32>
    %8 = vector.shape_cast %6 : vector<32x128xf32> to vector<4x8x128xf32>
    %cst_4 = arith.constant dense<0.000000e+00> : vector<8x128xf32>
    %9 = vector.multi_reduction <add>, %8, %cst_4 [0] : vector<4x8x128xf32> to vector<8x128xf32>
    %10 = arith.addf %7, %9 : vector<8x128xf32>
    %c0_5 = arith.constant 0 : index
    %c0_6 = arith.constant 0 : index
    %11 = vector.load %arg3[%c0_5, %c0_6] : memref<8x128xf32, #tpu.memory_space<vmem>>, vector<8x128xf32>
    tpu.vector_store %arg3[%c0_5, %c0_6], %10 {strides = array<i32>} : memref<8x128xf32, #tpu.memory_space<vmem>>, vector<8x128xf32>,
    return
  }
  func.func @transform_0(%arg0: i32, %arg1: i32) -> (i32, i32) {
    %c1_i32 = arith.constant 1 : i32
    %0 = arith.muli %arg0, %c1_i32 : i32
    %1 = arith.addi %0, %arg1 : i32
    %c0_i32 = arith.constant 0 : i32
    %c0_i32_0 = arith.constant 0 : i32
    return %1, %c0_i32 : i32, i32
  }
  func.func @transform_1(%arg0: i32, %arg1: i32) -> (i32, i32) {
    %c0_i32 = arith.constant 0 : i32
    %c0_i32_0 = arith.constant 0 : i32
    return %arg0, %c0_i32 : i32, i32
  }
}

</mosaic_0001>

<bundles_post_ra>
// kernel: tpu_custom_call.1
= control target key start
LH: loop header
LB: loop body
LE: loop exit
PB: predicated region body
PF: predicated region fallthrough
CT: control target
= control target key end

     0   :  { %6 = vsyncpa [#allocation3], 0  ;;  %s654_s0 = inlined_call_operand.hbm [shape: f32[64,128], index: 0, kind: input, shape index: {}]   ;;  %s655_s1 = inlined_call_operand.hbm [shape: f32[16,128], index: 1, kind: output, shape index: {}]  }
   0x1   :  { %8 = vsyncpa [#allocation3 + $0x1], 0 }
   0x2   :  { %9 = vsyncpa [#allocation4], 0 }
   0x3   :  { %11 = vsyncpa [#allocation4 + $0x1], 0  ;;  %s480_s6 = smov 0   ;;  %s482_s7 = smov 0  }
   0x4   :  { %s484_s8 = smov 0   ;;  %s486_s9 = smov 0  }
   0x5   :  { %s488_s10 = smov 0   ;;  %s490_s11 = smov 0  }
   0x6 LB: > { %s268_s12 = sadd.s32 4294967295, %s464_s11   ;;  %s269_s13 = sadd.s32 4294967294, %s464_s11   ;;  %s464_s11 = sphi %s490_s11, %s17_s11   ;;  %s460_s10 = sphi %s488_s10, %s670_s10   ;;  %s456_s9 = sphi %s486_s9, %s669_s9   ;;  %s452_s8 = sphi %s484_s8, %s668_s8   ;;  %s448_s7 = sphi %s482_s7, %s667_s7   ;;  %s444_s6 = sphi %s480_s6, %s666_s6  }
   0x7   : > { %s29_s14 = sadd.s32 1, %s460_s10  ;;  %s38_s15 = sadd.s32 1, %s452_s8 }
   0x8   : > { %p31_p0 = scmp.ge.s32.totalorder %s29_s14, 2  ;;  %p45_p1 = scmp.ne.s32.totalorder %s452_s8, %s448_s7 }
   0x9   : > { %p46_p2 = scmp.eq.s32.totalorder %s464_s11, 0  ;;  %p51_p3 = scmp.ne.s32.totalorder %s448_s7, %s444_s6 }
   0xa   : > { %s672_s14 = smov (%p31_p0, %s29_s14), 0  ;;  %p52_p5 = scmp.eq.s32.totalorder %s268_s12, 0 }
   0xb   : > { %p521_p4 = por %p46_p2, %p45_p1  ;;  %s35_s17 = ssub.s32 %s460_s10, %s672_s14 }
   0xc   : > { %p75_p6 = scmp.eq.s32.totalorder %s268_s12, 1  ;;  %p36_p7 = scmp.eq.s32.totalorder %s35_s17, 0 }
   0xd   : > { %p527_p8 = por %p52_p5, %p51_p3  ;;  %p81_p10 = scmp.eq.s32.totalorder %s269_s13, 1 }
   0xe   : > { %p531_p9 = por %p75_p6, %p45_p1  ;;  %p299_p13 = scmp.lt.s32.totalorder %s464_s11, 2 }
   0xf   : > { %s536_s20 = scalar_select %p36_p7, %s452_s8, %s38_s15  }
  0x10   : > { %s659_s19 = scalar_select %p531_p9, 1, 0 }
  0x11   : > { %p538_p11 = por %p81_p10, %p51_p3  ;;  %s101_s22 = sand.u32 1, %s452_s8  }
  0x12   : > { %s272_s23 = sshll.u32 %s101_s22, 5  ;;  %s286_s24 = sshll.u32 %s460_s10, 9 }
  0x13   : > { %s660_s21 = scalar_select %p538_p11, 1, 0 }
  0x14   : > { %s549_s27 = scalar_lea.hbm %s654_s0, %s286_s24  ;;  %s105_s28 = scalar_lea.vmem [#allocation2], %s272_s23 }
  0x15   : > { %s113_s29 = sshll.u32 %s105_s28, 4  ;;  %p555_p0 = pnand %p299_p13, %p521_p4  ;;  %s551_s29 = int_to_ptr.vmem [resolvable:$true] %s113_s29 }
  0x16   : > { %s560_s2 = scalar_lea.sflag [#allocation3], %s101_s22  ;;  %s352_s3 = scalar_lea.hbm %s549_s27, 512 }
  0x17   : > { %p353_p2 = scmp.ne.s32.totalorder %s549_s27, %s352_s3  ;;  %p354_p3 = pneg %p555_p0 }
  0x18   : > { %s357_s12 = scalar_lea.hbm %s654_s0, 1024  ;;  %p358_p4 = scmp.lt.u32.totalorder %s549_s27, %s654_s0 }
  0x19   : > { %p355_p5 = pnand %p354_p3, %p353_p2  ;;  %p359_p7 = scmp.lt.u32.totalorder %s357_s12, %s352_s3 }
  0x1a   : > { %p361_p13 = scmp.lt.u32.totalorder %s352_s3, %s549_s27 }
  0x1b   : > { %p356_p6 = pneg %p355_p5  ;;  %p360_p10 = por %p359_p7, %p358_p4 }
  0x1d   : > { %p362_p12 = por %p361_p13, %p360_p10 }
  0x1f   : > { %p363_p1 = pnand %p362_p12, %p356_p6 }
  0x21   : > { %366 = shalt.err (!%p363_p1)
}
  0x22   : > { %s367_s16 = scalar_lea.vmem %s551_s29, 512  ;;  %s466_s17 = smov [#allocation2]  }
  0x23   : > { %p368_p2 = scmp.ne.s32.totalorder %s551_s29, %s367_s16  ;;  %s372_s22 = sshll.u32 %s466_s17, 4  ;;  %s373_s22 = int_to_ptr.vmem [resolvable:$false] %s372_s22 }
  0x24   : > { %s374_s23 = scalar_lea.vmem %s373_s22, 1024  ;;  %p375_p9 = scmp.lt.s32.totalorder %s551_s29, %s373_s22 }
  0x25   : > { %p370_p5 = pnand %p368_p2, %p354_p3  ;;  %p376_p4 = scmp.lt.s32.totalorder %s374_s23, %s367_s16 }
  0x27   : > { %p371_p11 = pneg %p370_p5  ;;  %p377_p7 = por %p376_p4, %p375_p9 }
  0x29   : > { %p378_p10 = pnand %p377_p7, %p371_p11 }
  0x2b   : > { %381 = shalt.err (!%p378_p10)
}
  0x2c   : > { %s467_s24 = smov 128   ;;  %s468_s25 = smov 8  }
  0x2d   : > { %294 = dma.hbm_to_vmem [thread:$0]  (!%p555_p0), %s549_s27, 512, %s551_s29, %s560_s2, %s467_s24, %s467_s24, %s468_s25  }
  0x2e   : > { %p121_p12 = scmp.lt.s32.totalorder %s464_s11, 3  ;;  %p662_p1 = scmp.ge.s32.totalorder %s464_s11, 1 }
  0x30   : > { %p122_p3 = pnand %p662_p1, %p121_p12 }
  0x31   : > { %s592_s26 = sand.u32 (!%p122_p3), 1, %s448_s7  }
  0x32   : > { %125 = sbr.rel (%p122_p3) target bundleno = 84 (0x54), region = 24  ;;  %s276_s28 = sshll.u32 (!%p122_p3), %s592_s26, 5 }
  0x33   : > { %s128_s3 = scalar_lea.sflag (!%p122_p3), [#allocation3], %s592_s26  ;;  %s131_s4 = scalar_lea.vmem (!%p122_p3), [#allocation2], %s276_s28 }
  0x39   : > { %435 = dma.done.wait (%p527_p8), %s128_s3, 512  }
  0x3a   : > { %437 = vsyncadd (%p527_p8), %s128_s3, 4294966784  ;;  %v157_v0 = vld [vmem:[%s131_s4] sm:$0xff]  ;;  %v158_v1 = vld [vmem:[%s131_s4 + $0x8] sm:$0xff]  ;;  %s277_s27 = sshll.u32 %s592_s26, 3  ;;  %s283_s18 = sshll.u32 %s456_s9, 7 }
  0x3b   : > { %v159_v2 = vld [vmem:[%s131_s4 + $0x10] sm:$0xff]  ;;  %v160_v3 = vld [vmem:[%s131_s4 + $0x18] sm:$0xff]  ;;  %v278_v4 = vadd.f32 -1.0, %v157_v0  ;;  %v279_v5 = vadd.f32 -1.0, %v158_v1  ;;  %s149_s29 = scalar_lea.vmem [#allocation5], %s277_s27  ;;  %s605_s12 = scalar_lea.hbm %s655_s1, %s283_s18 }
  0x3c   : > { %v280_v6 = vadd.f32 -1.0, %v159_v2  ;;  %v281_v7 = vadd.f32 -1.0, %v160_v3  ;;  %s189_s30 = sshll.u32 %s149_s29, 4  ;;  %s176_s13 = scalar_lea.sflag [#allocation4], %s592_s26  ;;  %s607_s30 = int_to_ptr.vmem [resolvable:$true] %s189_s30 }
  0x3d   : > { %v165_v8 = vmul.f32 %v278_v4, %v278_v4  ;;  %v166_v9 = vmul.f32 %v279_v5, %v279_v5  ;;  %s382_s15 = scalar_lea.vmem %s607_s30, 128  ;;  %p663_p9 = scmp.ne.s32.totalorder %s659_s19, 0 }
  0x3e   : > { %v167_v10 = vmul.f32 %v280_v6, %v280_v6  ;;  %v168_v11 = vmul.f32 %v281_v7, %v281_v7  ;;  %p383_p8 = scmp.ne.s32.totalorder %s607_s30, %s382_s15  ;;  %s469_s9 = smov [#allocation5]  }
  0x3f   : > { %v170_v12 = vadd.f32 %v166_v9, %v165_v8  ;;  %s386_s16 = sshll.u32 %s469_s9, 4  ;;  %s387_s16 = int_to_ptr.vmem [resolvable:$false] %s386_s16 }
  0x40   : > { %p384_p11 = pnand %p383_p8, %p663_p9  ;;  %s388_s17 = scalar_lea.vmem %s387_s16, 256 }
  0x41   : > { %v171_v13 = vadd.f32 %v170_v12, %v167_v10  ;;  %p389_p6 = scmp.lt.s32.totalorder %s607_s30, %s387_s16  ;;  %p390_p13 = scmp.lt.s32.totalorder %s388_s17, %s382_s15 }
  0x42   : > { %p385_p0 = pneg %p384_p11 }
  0x43   : > { %v172_v14 = vadd.f32 %v171_v13, %v168_v11  ;;  %p391_p2 = por %p390_p13, %p389_p6 }
  0x45   : > { %174 = vst [vmem:[%s149_s29] sm:$0xff] %v172_v14  ;;  %p392_p5 = pnand %p391_p2, %p385_p0 }
  0x47   : > { %395 = shalt.err (!%p392_p5)
}
  0x48   : > { %s396_s22 = scalar_lea.hbm %s605_s12, 128  ;;  %s400_s25 = scalar_lea.hbm %s655_s1, 256 }
  0x49   : > { %p397_p4 = scmp.ne.s32.totalorder %s605_s12, %s396_s22  ;;  %p401_p12 = scmp.lt.u32.totalorder %s605_s12, %s655_s1 }
  0x4a   : > { %p402_p1 = scmp.lt.u32.totalorder %s400_s25, %s396_s22  ;;  %p404_p8 = scmp.lt.u32.totalorder %s396_s22, %s605_s12 }
  0x4b   : > { %p398_p7 = pnand %p397_p4, %p663_p9 }
  0x4c   : > { %p403_p3 = por %p402_p1, %p401_p12 }
  0x4d   : > { %p399_p10 = pneg %p398_p7 }
  0x4e   : > { %p405_p11 = por %p404_p8, %p403_p3 }
  0x50   : > { %p406_p0 = pnand %p405_p11, %p399_p10 }
  0x52   : > { %409 = shalt.err (!%p406_p0)
}
  0x53   : > { %289 = dma.vmem_to_hbm [thread:$0]  (%p663_p9), %s607_s30, 128, %s605_s12, %s176_s13  }
  0x54 PF: > { %s201_s3 = sand.u32 1, %s444_s6   ;;  %p664_p6 = scmp.ne.s32.totalorder %s660_s21, 0 }
  0x55   : > { %p665_p13 = scmp.ge.s32.totalorder %s464_s11, 2  ;;  %s202_s4 = scalar_lea.sflag [#allocation4], %s201_s3 }
  0x57   : > { %p296_p2 = pnand %p665_p13, %p664_p6 }
  0x59   : > { %439 = dma.done.wait (!%p296_p2), %s202_s4, 128  }
  0x5a   : > { %441 = vsyncadd (!%p296_p2), %s202_s4, 4294967168  ;;  %s17_s11 = sadd.s32 1, %s464_s11   ;;  %s666_s6 = smov %s448_s7 }
  0x5b   : > { %p14_p5 = scmp.ge.s32.totalorder %s17_s11, 4   ;;  %s667_s7 = smov %s452_s8 }
  0x5c   : > { %s668_s8 = smov %s536_s20  ;;  %s669_s9 = smov %s460_s10 }
  0x5d   : > { %s670_s10 = smov %s672_s14  ;;  %16 = sbr.rel (!%p14_p5) target bundleno = 6 (0x6), region = 73 }
  0x64   :  { %207 = vsyncpa [#allocation3], 1 }
  0x65   :  { %209 = vsyncpa [#allocation3 + $0x1], 1 }
  0x66   :  { %210 = vsyncpa [#allocation4], 1 }
  0x67   :  { %212 = vsyncpa [#allocation4 + $0x1], 1 }

</bundles_post_ra>
